<compile_context>
chip_gen: v6e
topology: v6e:2x2x1
jax: 0.10.0
libtpu: 0.0.40
codegen_flags: <defaults>
</compile_context>

<pallas_src>
import functools

import jax
import jax.numpy as jnp
from jax import lax
from jax.experimental import pallas as pl
from jax.experimental.pallas import tpu as pltpu

CNN_D = 15  # mirrors `cnn_d = 15` in train.py


def _round_up(x, m):
    return ((x + m - 1) // m) * m


def _pick_batch_tile(b_sz):
    """Rows per grid step: big enough for MXU-sized M (TB*L rows) and dense
    (8n, 128m) output stores, small enough to keep >= 2 "parallel" grid steps
    so both TensorCores on v7x get work (neutral on v5e/v6e)."""
    if b_sz < 16:
        return b_sz                        # single step; block == full array dims
    tb = min(64, _round_up(b_sz, 8))
    while b_sz <= tb:                      # keep at least 2 grid steps
        tb //= 2
    return max(8, _round_up(tb, 8))


def _conv_bank_kernel(x_ref, w_ref, b_ref, maxt_ref, o_ref, *, k_max, l_rows):
    """Fused conv bank (all kernel sizes) for one batch tile.

    x_ref:    (TB, L + k_max - 1, Cin_p)  bf16   time-padded rows, channels in lanes
    w_ref:    (k_max * Cin_p, Cp)         bf16   packed im2col weights (all groups)
    b_ref:    (1, Cp)                     f32    bias (zeros in padded lanes)
    maxt_ref: (1, Cp)                     int32  last valid time index per channel
    o_ref:    (TB, Cp)                    f32    pooled features
    """
    x = x_ref[...]
    tb, _, cin_p = x.shape
    cp = o_ref.shape[-1]

    # im2col: window row t = [x[t], x[t+1], ..., x[t+k_max-1]] -> ONE MXU matmul
    # with K = k_max*Cin_p and N = Cp (fills the 256-wide MXU on v6e/v7x).
    xw = jnp.concatenate([x[:, j:j + l_rows, :] for j in range(k_max)], axis=-1)
    xw = xw.reshape(tb * l_rows, k_max * cin_p)
    acc = jnp.dot(xw, w_ref[...], preferred_element_type=jnp.float32)
    acc = acc.reshape(tb, l_rows, cp)

    # Mask each channel group's invalid tail positions (t > L - k) before pooling.
    t_idx = lax.broadcasted_iota(jnp.int32, (l_rows, cp), 0)
    valid = t_idx <= maxt_ref[...]                          # (L, Cp)
    acc = jnp.where(valid[None, :, :], acc, -1e30)
    pooled = jnp.max(acc, axis=1)                           # (TB, Cp)

    # Bias + tanh AFTER the max (exact: tanh monotone, bias per-channel const).
    o_ref[...] = jnp.tanh(pooled + b_ref[...])


def prepare_conv_params(weights, biases, kernel_sizes, in_channels=CNN_D):
    """One-time weight repacking (hoisted out of the hot path).

    weights[i]: (25*k, C_in, k) f32 -- PyTorch nn.Conv1d (out, in, tap) layout.
    biases[i]:  (25*k,) f32
    Returns (w_im2col bf16 (k_max*Cin_p, Cp), bias f32 (1, Cp),
             k_per_channel int32 (1, Cp)).
    """
    k_max = max(kernel_sizes)
    cin_p = _round_up(in_channels, 8)
    c_out_total = sum(25 * k for k in kernel_sizes)
    cp = _round_up(c_out_total, 128)

    w_all = jnp.zeros((k_max, cin_p, cp), jnp.float32)
    b_all = jnp.zeros((1, cp), jnp.float32)
    k_ch = jnp.ones((1, cp), jnp.int32)      # padded lanes: k=1 (never masked)
    off = 0
    for k, w, b in zip(kernel_sizes, weights, biases):
        c_out = 25 * k
        w_r = jnp.transpose(w.astype(jnp.float32), (2, 1, 0))   # (k, C_in, C_out)
        w_all = w_all.at[:k, :in_channels, off:off + c_out].set(w_r)
        b_all = b_all.at[0, off:off + c_out].set(b.astype(jnp.float32))
        k_ch = k_ch.at[0, off:off + c_out].set(k)
        off += c_out

    # im2col layout: row index = tap*Cin_p + cin  (matches the in-kernel window).
    w_im2col = w_all.reshape(k_max * cin_p, cp).astype(jnp.bfloat16)
    return w_im2col, b_all, k_ch


@functools.partial(jax.jit, static_argnames=("kernel_sizes",))
def conv_bank_forward(words, params, *, kernel_sizes):
    """words: (B, C_in, L) f32.  Returns (B, sum(25*k for k in kernel_sizes))."""
    w_im2col, b_all, k_ch = params
    b_sz, c_in, seq = words.shape
    cin_p = _round_up(c_in, 8)
    k_max = max(kernel_sizes)
    c_out_total = sum(25 * k for k in kernel_sizes)
    cp = w_im2col.shape[-1]
    assert seq >= k_max, "sequence shorter than the largest kernel size"
    l_pad = seq + k_max - 1

    tb = _pick_batch_tile(b_sz)
    b_pad = _round_up(b_sz, tb)

    # Channels -> lanes, zero-pad time tail (k_max-1), channel pad to 16, batch
    # pad to a tile multiple; bf16 halves this one wrapper-side materialization.
    # TODO(synk): fold this transpose/pad into the pallas_call inputs via
    # CompilerParams(allow_input_fusion=...) to drop the extra HBM round trip.
    x_t = jnp.transpose(words, (0, 2, 1)).astype(jnp.bfloat16)
    x_t = jnp.pad(x_t, ((0, b_pad - b_sz), (0, k_max - 1), (0, cin_p - c_in)))

    maxt = (seq - k_ch).astype(jnp.int32)                    # (1, Cp) last valid t

    out = pl.pallas_call(
        functools.partial(_conv_bank_kernel, k_max=k_max, l_rows=seq),
        out_shape=jax.ShapeDtypeStruct((b_pad, cp), jnp.float32),
        grid_spec=pltpu.PrefetchScalarGridSpec(
            num_scalar_prefetch=0,
            grid=(b_pad // tb,),
            in_specs=[
                pl.BlockSpec((tb, l_pad, cin_p), lambda i: (i, 0, 0)),
                pl.BlockSpec((k_max * cin_p, cp), lambda i: (0, 0)),
                pl.BlockSpec((1, cp), lambda i: (0, 0)),
                pl.BlockSpec((1, cp), lambda i: (0, 0)),
            ],
            out_specs=pl.BlockSpec((tb, cp), lambda i: (i, 0)),
        ),
        compiler_params=pltpu.CompilerParams(
            dimension_semantics=("parallel",)),
    )(x_t, w_im2col, b_all, maxt)

    # TODO(synk): for very long sequences add a time-tile grid axis with a
    # running-max VMEM accumulator (size it against v7x's 64 MiB VMEM).
    return out[:b_sz, :c_out_total]


def _reference(words, weights, biases, kernel_sizes):
    """Pure-JAX f32 re-derivation of the PyTorch forward."""
    x_t = jnp.transpose(words, (0, 2, 1))                         # (B, L, C_in)
    seq = words.shape[2]
    outs = []
    for k, w, b in zip(kernel_sizes, weights, biases):
        l_out = seq - k + 1
        acc = jnp.zeros((words.shape[0], l_out, w.shape[0]), jnp.float32)
        acc = acc + b[None, None, :]
        for j in range(k):
            acc = acc + jnp.einsum("blc,oc->blo",
                                   x_t[:, j:j + l_out, :], w[:, :, j])
        outs.append(jnp.max(jnp.tanh(acc), axis=1))               # (B, 25*k)
    return jnp.concatenate(outs, axis=1)


if __name__ == "__main__":
    key = jax.random.PRNGKey(0)
    kernel_sizes = (1, 2, 3)
    batch = 2
    seq_len = 16
    c_in = CNN_D

    key, k_x = jax.random.split(key)
    words = jax.random.normal(k_x, (batch, c_in, seq_len), jnp.float32)

    # Deterministic nn.Conv1d-style init: U(-1/sqrt(C_in*k), 1/sqrt(C_in*k)).
    weights, biases = [], []
    for k in kernel_sizes:
        key, k_w, k_b = jax.random.split(key, 3)
        bound = 1.0 / float(jnp.sqrt(jnp.float32(c_in * k)))
        weights.append(jax.random.uniform(
            k_w, (25 * k, c_in, k), jnp.float32, -bound, bound))
        biases.append(jax.random.uniform(
            k_b, (25 * k,), jnp.float32, -bound, bound))

    params = prepare_conv_params(weights, biases, kernel_sizes, in_channels=c_in)

    y = conv_bank_forward(words, params, kernel_sizes=kernel_sizes)
    jax.block_until_ready(y)

    ref = _reference(words, weights, biases, kernel_sizes)
    assert y.shape == (batch, 25 * sum(kernel_sizes)), y.shape
    # bf16 MXU operands -> compare against the f32 reference at bf16 tolerance.
    err = float(jnp.max(jnp.abs(y - ref)))
    assert err < 3e-2, err

    print("KERNEL_OK")
</pallas_src>

<mosaic_0001>
module attributes {stable_mosaic.version = 11 : i64} {
  func.func @_conv_bank_kernel(%arg0: i32, %arg1: memref<2x18x16xbf16, #tpu.memory_space<vmem>>, %arg2: memref<48x256xbf16, #tpu.memory_space<vmem>>, %arg3: memref<1x256xf32, #tpu.memory_space<vmem>>, %arg4: memref<1x256xi32, #tpu.memory_space<vmem>>, %arg5: memref<2x256xf32, #tpu.memory_space<vmem>>) attributes {dimension_semantics = [#tpu.dimension_semantics<parallel>], iteration_bounds = array<i64: 1>, scalar_prefetch = 0 : i64, scratch_operands = 0 : i64, tpu.core_type = #tpu.core_type<tc>, window_params = [{transform_indices = @transform_0, window_bounds = array<i64: 2, 18, 16>}, {pipeline_mode = #tpu.pipeline_mode<synchronous>, transform_indices = @transform_1, window_bounds = array<i64: 48, 256>}, {pipeline_mode = #tpu.pipeline_mode<synchronous>, transform_indices = @transform_2, window_bounds = array<i64: 1, 256>}, {pipeline_mode = #tpu.pipeline_mode<synchronous>, transform_indices = @transform_3, window_bounds = array<i64: 1, 256>}, {transform_indices = @transform_4, window_bounds = array<i64: 2, 256>}]} {
    %c0 = arith.constant 0 : index
    %c0_0 = arith.constant 0 : index
    %c0_1 = arith.constant 0 : index
    %0 = vector.load %arg1[%c0, %c0_0, %c0_1] : memref<2x18x16xbf16, #tpu.memory_space<vmem>>, vector<2x18x16xbf16>
    %1 = vector.extract_strided_slice %0 {offsets = [0, 0, 0], sizes = [2, 16, 16], strides = [1, 1, 1]} : vector<2x18x16xbf16> to vector<2x16x16xbf16>
    %2 = vector.extract_strided_slice %0 {offsets = [0, 1, 0], sizes = [2, 16, 16], strides = [1, 1, 1]} : vector<2x18x16xbf16> to vector<2x16x16xbf16>
    %3 = vector.extract_strided_slice %0 {offsets = [0, 2, 0], sizes = [2, 16, 16], strides = [1, 1, 1]} : vector<2x18x16xbf16> to vector<2x16x16xbf16>
    %4 = tpu.concatenate %1, %2, %3 in 2 : vector<2x16x16xbf16>, vector<2x16x16xbf16>, vector<2x16x16xbf16> -> vector<2x16x48xbf16>
    %5 = vector.shape_cast %4 : vector<2x16x48xbf16> to vector<32x48xbf16>
    %c0_2 = arith.constant 0 : index
    %c0_3 = arith.constant 0 : index
    %6 = vector.load %arg2[%c0_2, %c0_3] : memref<48x256xbf16, #tpu.memory_space<vmem>>, vector<48x256xbf16>
    %cst = arith.constant dense<0.000000e+00> : vector<32x256xf32>
    %7 = tpu.matmul %5, %6, %cst {dimension_numbers = #tpu.dot_dimension_numbers<[1], [0], [0], [1], [0, 0, 1, 1], [], []>} : vector<32x48xbf16>, vector<48x256xbf16>, vector<32x256xf32> -> vector<32x256xf32>
    %8 = vector.shape_cast %7 : vector<32x256xf32> to vector<2x16x256xf32>
    %9 = tpu.iota {dimensions = array<i32: 0>} : vector<16x256xi32>
    %c0_4 = arith.constant 0 : index
    %c0_5 = arith.constant 0 : index
    %10 = vector.load %arg4[%c0_4, %c0_5] : memref<1x256xi32, #tpu.memory_space<vmem>>, vector<1x256xi32>
    %11 = vector.broadcast %10 : vector<1x256xi32> to vector<16x256xi32>
    %12 = arith.cmpi sle, %9, %11 : vector<16x256xi32>
    %13 = vector.shape_cast %12 : vector<16x256xi1> to vector<1x16x256xi1>
    %cst_6 = arith.constant -1.000000e+30 : f32
    %14 = vector.shape_cast %13 : vector<1x16x256xi1> to vector<1x16x256xi1>
    %15 = vector.broadcast %14 : vector<1x16x256xi1> to vector<2x16x256xi1>
    %16 = vector.broadcast %cst_6 : f32 to vector<2x16x256xf32>
    %17 = arith.select %15, %8, %16 : vector<2x16x256xi1>, vector<2x16x256xf32>
    %cst_7 = arith.constant dense<0xFF800000> : vector<2x256xf32>
    %18 = vector.multi_reduction <maximumf>, %17, %cst_7 [1] : vector<2x16x256xf32> to vector<2x256xf32>
    %c0_8 = arith.constant 0 : index
    %c0_9 = arith.constant 0 : index
    %19 = vector.load %arg3[%c0_8, %c0_9] : memref<1x256xf32, #tpu.memory_space<vmem>>, vector<1x256xf32>
    %20 = vector.broadcast %19 : vector<1x256xf32> to vector<2x256xf32>
    %21 = arith.addf %18, %20 : vector<2x256xf32>
    %22 = math.tanh %21 : vector<2x256xf32>
    %c0_10 = arith.constant 0 : index
    %c0_11 = arith.constant 0 : index
    %23 = vector.load %arg5[%c0_10, %c0_11] : memref<2x256xf32, #tpu.memory_space<vmem>>, vector<2x256xf32>
    tpu.vector_store %arg5[%c0_10, %c0_11], %22 {strides = array<i32>} : memref<2x256xf32, #tpu.memory_space<vmem>>, vector<2x256xf32>,
    return
  }
  func.func @transform_0(%arg0: i32) -> (i32, i32, i32) {
    %c0_i32 = arith.constant 0 : i32
    %c0_i32_0 = arith.constant 0 : i32
    %c0_i32_1 = arith.constant 0 : i32
    return %arg0, %c0_i32, %c0_i32_0 : i32, i32, i32
  }
  func.func @transform_1(%arg0: i32) -> (i32, i32) {
    %c0_i32 = arith.constant 0 : i32
    %c0_i32_0 = arith.constant 0 : i32
    %c0_i32_1 = arith.constant 0 : i32
    return %c0_i32, %c0_i32_0 : i32, i32
  }
  func.func @transform_2(%arg0: i32) -> (i32, i32) {
    %c0_i32 = arith.constant 0 : i32
    %c0_i32_0 = arith.constant 0 : i32
    %c0_i32_1 = arith.constant 0 : i32
    return %c0_i32, %c0_i32_0 : i32, i32
  }
  func.func @transform_3(%arg0: i32) -> (i32, i32) {
    %c0_i32 = arith.constant 0 : i32
    %c0_i32_0 = arith.constant 0 : i32
    %c0_i32_1 = arith.constant 0 : i32
    return %c0_i32, %c0_i32_0 : i32, i32
  }
  func.func @transform_4(%arg0: i32) -> (i32, i32) {
    %c0_i32 = arith.constant 0 : i32
    %c0_i32_0 = arith.constant 0 : i32
    return %arg0, %c0_i32 : i32, i32
  }
}

</mosaic_0001>

<bundles_post_ra>
// kernel: conv_bank_forward.1
= control target key start
LH: loop header
LB: loop body
LE: loop exit
PB: predicated region body
PF: predicated region fallthrough
CT: control target
= control target key end

     0   :  { %vm41_vm0 = vsmask.f32 7424  ;;  %vm70_vm1 = vcmask 1046528   ;;  %s380_s30 = smov 16   ;;  %s461_s0 = inlined_call_operand.vmem [shape: bf16[2,18,16], index: 0, kind: input, shape index: {}]   ;;  %s462_s1 = inlined_call_operand.vmem [shape: bf16[48,256], index: 1, kind: input, shape index: {}]   ;;  %s463_s2 = inlined_call_operand.vmem [shape: f32[1,256], index: 2, kind: input, shape index: {}]   ;;  %s464_s3 = inlined_call_operand.vmem [shape: s32[1,256], index: 3, kind: input, shape index: {}]   ;;  %s465_s4 = inlined_call_operand.hbm [shape: f32[2,256], index: 4, kind: output, shape index: {}]  }
   0x1   :  { %v337_v0 = vld [vmem:[%s461_s0 + $0xc] sm:$0xff]   ;;  %v338_v1 = vld [vmem:[%s461_s0 + $0x14] ss:$0 sps:$4 sm:$0x11]   ;;  %v339_v2 = vld [vmem:[%s461_s0] sm:$0xff]  }
   0x2   :  { %v55_v3 = vshrl.u32 %v337_v0, 16  ;;  %v57_v4 = vshll.u32 %v337_v0, 16  ;;  %v62_v5 = vshll.u32 %v338_v1, 16  ;;  %v340_v6 = vld [vmem:[%s461_s0 + $0x8] ss:$0 sps:$4 sm:$0x11]  }
   0x3   :  { %v43_v7 = vshrl.u32 %v339_v2, 16  ;;  %v45_v8 = vshll.u32 %v339_v2, 16  ;;  %v50_v12 = vshll.u32 %v340_v6, 16  ;;  %v341_v13 = vld [vmem:[%s462_s1 + $0x24] ss:$8 sps:$4 sm:$0xff]   ;;  %v74_v15 = vrot.slane %v337_v0, 1 }
   0x4   :  { %v59_v9 = vrot.slane %v57_v4, 1  ;;  %v64_v10 = vrot.slane %v62_v5, 1  ;;  %v75_v16 = vrot.slane %v338_v1, 1  ;;  %v343_v17 = vld [vmem:[%s462_s1 + $0x20] ss:$8 sps:$4 sm:$0xff]   ;;  %v71_v20 = vrot.slane %v339_v2, 1  ;;  %142 = vmatprep.subr.bf16.mxu0 %v341_v13  ;;  %326 = vmatprep.subr.bf16.mxu1 %v341_v13 }
   0x5   :  { %v47_v11 = vrot.slane %v45_v8, 1  ;;  %v52_v19 = vrot.slane %v50_v12, 1  ;;  %v72_v21 = vrot.slane %v340_v6, 1  ;;  %v344_v22 = vld [vmem:[%s462_s1 + $0x14] ss:$8 sps:$4 sm:$0xff]   ;;  %143 = vmatpush1.bf16.msra.mxu0 %v343_v17  ;;  %329 = vmatpush1.bf16.msra.mxu1 %v343_v17 }
   0x6   :  { %v60_v14 = vor.u32 %v59_v9, %v55_v3  ;;  %v346_v24 = vld [vmem:[%s462_s1 + $0x10] ss:$8 sps:$4 sm:$0xff]   ;;  %144 = vmatprep.subr.bf16.mxu0 %v344_v22  ;;  %v347_v26 = vld [vmem:[%s462_s1 + $0x4] ss:$8 sps:$4 sm:$0xff]  }
   0x7   :  { %v48_v18 = vor.u32 %v47_v11, %v43_v7 }
   0x8   :  { %v65_v23 = vsel %vm41_vm0, %v60_v14, %v64_v10 }
   0x9   :  { %68 = vrot.lane.b32.xlu0 %v65_v23, %s380_s30  ;;  %v53_v25 = vsel %vm41_vm0, %v48_v18, %v52_v19 }
   0xa   :  { %9 = vsyncpa [#allocation3], 0  ;;  %66 = vrot.lane.b32.xlu1 %v53_v25, %s380_s30  ;;  %v76_v27 = vsel %vm70_vm1, %v74_v15, %v75_v16  ;;  %327 = vmatprep.subr.bf16.mxu1 %v344_v22  ;;  %v73_v28 = vsel %vm70_vm1, %v71_v20, %v72_v21  ;;  %v381_v29 = vmov 0   ;;  %v349_v30 = vld [vmem:[%s462_s1] ss:$8 sps:$4 sm:$0xff]   ;;  %s382_s9 = smov 32   ;;  %v185_v39 = vlaneseq }
   0xb   :  { %164 = vmatprep.mubr.bf16.mxu0 %v381_v29  ;;  %174 = vmatprep.mubr.bf16.mxu1 %v381_v29  ;;  %vm81_vm2 = vcmask 130048   ;;  %vm86_vm3 = vcmask 261120   ;;  %vm127_vm4 = vcmask 392192   ;;  %v188_v42 = vld [vmem:[%s464_s3] sm:$0x3]  ;;  %vm290_vm9 = vcmask 1041409  }
   0xc   :  { %145 = vmatpush1.bf16.msra.mxu0 %v346_v24  ;;  %330 = vmatpush1.bf16.msra.mxu1 %v346_v24  ;;  %v444_v40 = vshrl.u32 %v185_v39, 7  ;;  %v245_v11 = vld [vmem:[%s463_s2] sm:$0x3]  ;;  %vm292_vm10 = vcmask 1043459   ;;  %vm294_vm11 = vcmask 1045509   ;;  %s384_s2 = smov [#allocation2]  }
   0xd   :  { %79 = vrot.lane.b32.xlu0 %v76_v27, %s382_s9  ;;  %146 = vmatprep.subr.bf16.mxu0 %v347_v26  ;;  %s306_s12 = sshll.u32 %s384_s2, 4  ;;  %vm296_vm12 = vcmask 1047559   ;;  %s307_s12 = int_to_ptr.vmem [resolvable:$true] %s306_s12 }
   0xe   :  { %77 = vrot.lane.b32.xlu1 %v73_v28, %s382_s9  ;;  %328 = vmatprep.subr.bf16.mxu1 %v347_v26  ;;  %v191_v41 = vsub.s32 0, %v444_v40  ;;  %v195_v43 = vsub.s32 1, %v444_v40  ;;  %v187_v45 = vadd.s32 8, %v444_v40  ;;  %s358_s13 = scalar_lea.vmem %s307_s12, 64  ;;  %p363_p1 = scmp.lt.s32.totalorder %s307_s12, %s307_s12 }
   0xf   :  { %p359_p0 = scmp.ne.s32.totalorder %s307_s12, %s358_s13  ;;  %p364_p2 = scmp.lt.s32.totalorder %s358_s13, %s358_s13 }
  0x10   :  { %147 = vmatpush1.bf16.msra.mxu0 %v349_v30  ;;  %331 = vmatpush1.bf16.msra.mxu1 %v349_v30  ;;  %v192_v44 = vrot.slane %v188_v42, %v191_v41  ;;  %v196_v47 = vrot.slane %v188_v42, %v195_v43  ;;  %v250_v18 = vrot.slane %v245_v11, %v191_v41 }
  0x11   :  { %v254_v23 = vrot.slane %v245_v11, %v195_v43  ;;  %p365_p3 = por %p364_p2, %p363_p1 }
  0x12   :  { %vm197_vm5 = vcmp.le.s32.totalorder %v444_v40, %v192_v44  ;;  %vm199_vm6 = vcmp.le.s32.totalorder %v187_v45, %v192_v44  ;;  %vm198_vm7 = vcmp.le.s32.totalorder %v444_v40, %v196_v47  ;;  %vm200_vm8 = vcmp.le.s32.totalorder %v187_v45, %v196_v47 }
  0x13   :  { %p366_p4 = pnand %p365_p3, %p359_p0 }
  0x7b   :  { %v69_v31 = vpop.permute.xlu0 %68 }
  0x7c   :  { %v67_v32 = vpop.permute.xlu1 %66  ;;  %v85_v34 = vsel %vm81_vm2, %v337_v0, %v69_v31 }
  0x7d   :  { %v83_v33 = vsel %vm81_vm2, %v339_v2, %v67_v32 }
  0x7f   :  { %v80_v35 = vpop.permute.xlu0 %79 }
  0x80   :  { %v90_v36 = vsel %vm86_vm3, %v85_v34, %v80_v35  ;;  %v78_v37 = vpop.permute.xlu1 %77  ;;  %v383_v34 = vmov 1983009808  }
  0x81   :  { %v88_v38 = vsel %vm86_vm3, %v83_v33, %v78_v37  ;;  %325 = vmatmul.mubr.msk.bf16.vlgmr.msra.gmra.mxu1 %vm127_vm4, %v90_v36  ;;  %v271_v35 = vunpack.c.l.s4 %v383_v34 }
  0x82   :  { %324 = vmatmul.mubr.msk.bf16.vlgmr.msra.gmra.mxu0 %vm127_vm4, %v88_v38 }
  0x83   :  { %v272_v36 = vunpack.c.0.s8 %v271_v35 }
  0x85   :  { %v275_v39 = vsub.s32 %v272_v36, %v444_v40 }
 0x141   :  { %v176_v46 = vpop.f32.mrf.mxu1 }
 0x142   :  { %v166_v48 = vpop.f32.mrf.mxu0  ;;  %v213_v52 = vsel %vm197_vm5, %v176_v46, -1e+30 }
 0x143   :  { %v178_v49 = vpop.f32.mrf.mxu1  ;;  %v209_v55 = vsel %vm197_vm5, %v166_v48, -1e+30 }
 0x144   :  { %v168_v50 = vpop.f32.mrf.mxu0  ;;  %v214_v59 = vsel %vm198_vm7, %v178_v49, -1e+30 }
 0x145   :  { %v180_v51 = vpop.f32.mrf.mxu1  ;;  %v210_v63 = vsel %vm198_vm7, %v168_v50, -1e+30 }
 0x146   :  { %v170_v53 = vpop.f32.mrf.mxu0  ;;  %v215_v54 = vsel %vm199_vm6, %v180_v51, -1e+30 }
 0x147   :  { %v211_v56 = vsel %vm199_vm6, %v170_v53, -1e+30  ;;  %v231_v57 = vmax.f32 %v213_v52, %v215_v54  ;;  %v182_v58 = vpop.f32.mrf.mxu1 }
 0x148   :  { %v217_v60 = vmax.f32 %v209_v55, %v211_v56  ;;  %v172_v61 = vpop.f32.mrf.mxu0  ;;  %v216_v62 = vsel %vm200_vm8, %v182_v58, -1e+30 }
 0x149   :  { %v232_v0 = vrot.slane %v231_v57, 4  ;;  %v212_v1 = vsel %vm200_vm8, %v172_v61, -1e+30  ;;  %v238_v2 = vmax.f32 %v214_v59, %v216_v62 }
 0x14a   :  { %v218_v3 = vrot.slane %v217_v60, 4  ;;  %v224_v4 = vmax.f32 %v210_v63, %v212_v1 }
 0x14b   :  { %v233_v5 = vmax.f32 %v231_v57, %v232_v0  ;;  %v239_v6 = vrot.slane %v238_v2, 4 }
 0x14c   :  { %v219_v7 = vmax.f32 %v217_v60, %v218_v3  ;;  %v225_v8 = vrot.slane %v224_v4, 4 }
 0x14d   :  { %v234_v9 = vrot.slane %v233_v5, 2  ;;  %v240_v10 = vmax.f32 %v238_v2, %v239_v6 }
 0x14e   :  { %v220_v12 = vrot.slane %v219_v7, 2  ;;  %v226_v13 = vmax.f32 %v224_v4, %v225_v8 }
 0x14f   :  { %v235_v14 = vmax.f32 %v233_v5, %v234_v9  ;;  %v241_v15 = vrot.slane %v240_v10, 2 }
 0x150   :  { %v221_v16 = vmax.f32 %v219_v7, %v220_v12  ;;  %v227_v17 = vrot.slane %v226_v13, 2 }
 0x151   :  { %v236_v19 = vrot.slane %v235_v14, 1  ;;  %v242_v20 = vmax.f32 %v240_v10, %v241_v15 }
 0x152   :  { %v222_v21 = vrot.slane %v221_v16, 1  ;;  %v228_v22 = vmax.f32 %v226_v13, %v227_v17 }
 0x153   :  { %v237_v24 = vmax.f32 %v235_v14, %v236_v19  ;;  %v243_v25 = vrot.slane %v242_v20, 1 }
 0x154   :  { %v223_v26 = vmax.f32 %v221_v16, %v222_v21  ;;  %v229_v27 = vrot.slane %v228_v22, 1 }
 0x155   :  { %v259_v28 = vadd.f32 %v250_v18, %v237_v24  ;;  %v244_v29 = vmax.f32 %v242_v20, %v243_v25 }
 0x156   :  { %v257_v30 = vadd.f32 %v250_v18, %v223_v26  ;;  %v230_v31 = vmax.f32 %v228_v22, %v229_v27 }
 0x157   :  { %350 = vtanh.f32 %v259_v28  ;;  %v260_v32 = vadd.f32 %v254_v23, %v244_v29 }
 0x158   :  { %352 = vtanh.f32 %v257_v30  ;;  %v258_v33 = vadd.f32 %v254_v23, %v230_v31 }
 0x159   :  { %354 = vtanh.f32 %v260_v32 }
 0x15a   :  { %356 = vtanh.f32 %v258_v33 }
 0x164   :  { %v351_v37 = vpop.eup %350 }
 0x165   :  { %v353_v38 = vpop.eup %352 }
 0x166   :  { %v355_v41 = vpop.eup %354 }
 0x167   :  { %v357_v42 = vpop.eup %356  ;;  %v277_v43 = vcombine.low %v351_v37, %v355_v41 }
 0x168   :  { %v269_v44 = vcombine.low %v353_v38, %v357_v42 }
 0x169   :  { %v284_v45 = vrot.slane %v277_v43, %v275_v39 }
 0x16a   :  { %v276_v46 = vrot.slane %v269_v44, %v275_v39 }
 0x16b   :  { %v289_v47 = vrot.slane %v284_v45, 7 }
 0x16d   :  { %v291_v48 = vsel %vm290_vm9, %v289_v47, %v276_v46 }
 0x16e   :  { %v293_v49 = vsel %vm292_vm10, %v289_v47, %v291_v48 }
 0x16f   :  { %v295_v50 = vsel %vm294_vm11, %v289_v47, %v293_v49 }
 0x170   :  { %v297_v51 = vsel %vm296_vm12, %v289_v47, %v295_v50 }
 0x171   :  { %299 = vst [vmem:[#allocation2] sm:$0xf] %v297_v51 }
 0x172   :  { %369 = shalt.err (!%p366_p4)
}
 0x173   :  { %309 = dma.vmem_to_hbm [thread:$0]  %s307_s12, 64, %s465_s4, [#allocation3]  }
 0x174   :  { %378 = dma.done.wait [#allocation3], 64  }
 0x175   :  { %379 = vsyncadd [#allocation3], 4294967232 }
 0x176   :  { %313 = vsyncpa [#allocation3], 1 }

</bundles_post_ra>
